<compile_context>
chip_gen: v5e
topology: v5e:2x2
jax: 0.10.0
libtpu: 0.0.40
codegen_flags: <defaults>
</compile_context>

<pallas_src>
import functools

import jax
import jax.numpy as jnp
from jax.experimental import pallas as pl
from jax.experimental.pallas import tpu as pltpu


LANE = 128          # every channel dim is padded to a multiple of the lane width
N_CHUNK = 128       # per-layer output-column chunk inside the fused kernel


def _round_up(v, m):
    return ((v + m - 1) // m) * m


def _pad2d(a, rows, cols):
    return jnp.pad(a, ((0, rows - a.shape[0]), (0, cols - a.shape[1])))


def _vmem_capacity_bytes():
    """Per-TensorCore VMEM capacity; conservative default if the query fails."""
    try:
        cap = int(pltpu.get_tpu_info().vmem_capacity_bytes)
        if cap > 0:
            return cap
    except Exception:
        pass
    return 64 * 1024 * 1024          # v7x per-core VMEM (smallest current gen)


def _choose_row_tiling(m, tm_cap):
    """Pick (tm, m_pad) minimizing padded rows + per-grid-step overhead, then
    ensure the 'parallel' row axis has >= 2 steps when there is enough work so
    both TensorCores of a v7x chip get used (harmless on v5e/v6e)."""
    m8 = _round_up(m, 8)
    cands = [t for t in (8, 16, 32, 64, 128, 256, 512) if t <= tm_cap]

    def cost(t):
        m_pad = _round_up(m8, t)
        return m_pad + 64 * (m_pad // t)   # padded rows + step overhead (rows-equiv)

    tm = min(cands, key=lambda t: (cost(t), -t))
    m_pad = _round_up(m8, tm)
    if m_pad // tm == 1 and tm >= 16:
        tm //= 2                            # give the parallel axis >= 2 steps
    return tm, m_pad


# ---------------------------------------------------------------------------
# Activation epilogue (shared by both kernels).
# ---------------------------------------------------------------------------
def _activate_f32(y, name):
    if name == "relu":
        return jnp.maximum(y, 0.0)
    if name == "leaky_relu":
        return jnp.where(y >= 0.0, y, 0.01 * y)
    if name == "elu":
        return jnp.where(y >= 0.0, y, jnp.exp(y) - 1.0)
    if name == "sigmoid":
        return 1.0 / (1.0 + jnp.exp(-y))
    if name == "tanh":
        return jnp.tanh(y)
    raise ValueError(f"Wrong activation name: {name}")


def _epilogue(y_f32, act_name, do_act, out_dtype):
    # ReLU commutes with the down-cast, so cast first: on v6e/v7x the bf16 VPU
    # does the max at 2 elem per lane slot; on v5e the compiler simply upcasts.
    if do_act and act_name == "relu":
        return jnp.maximum(y_f32.astype(out_dtype), 0)
    if do_act:
        y_f32 = _activate_f32(y_f32, act_name)
    return y_f32.astype(out_dtype)


# ---------------------------------------------------------------------------
# Fused, weight-resident kernel: one row tile through every layer.
# refs = (x, w0, b0, w1, b1, ..., out[, scratch_a, scratch_b])
# ---------------------------------------------------------------------------
def _fused_mlp_kernel(*refs, num_layers, act_name, activate_last):
    x_ref = refs[0]
    o_ref = refs[1 + 2 * num_layers]
    scratch = refs[2 + 2 * num_layers:]        # () or two bf16 ping-pong buffers

    in_ref = x_ref
    for i in range(num_layers):
        w_ref = refs[1 + 2 * i]                # (K_pad, N_pad) bf16, VMEM resident
        b_ref = refs[2 + 2 * i]                # (1,  N_pad) f32
        k_pad, n_pad = w_ref.shape
        last = i == num_layers - 1
        out_ref = o_ref if last else scratch[i % 2]
        do_act = (act_name is not None) and (activate_last if last else True)
        # 128-wide N chunks bound the live f32 result to tm*128*4 bytes (well
        # under the vreg file); the LHS is re-loaded per chunk rather than held
        # live across the whole layer.
        for n0 in range(0, n_pad, N_CHUNK):
            nc = min(N_CHUNK, n_pad - n0)
            y = jnp.dot(in_ref[:, 0:k_pad], w_ref[:, n0:n0 + nc],
                        preferred_element_type=jnp.float32)
            y = y + b_ref[:, n0:n0 + nc]
            out_ref[:, n0:n0 + nc] = _epilogue(y, act_name, do_act, out_ref.dtype)
        in_ref = out_ref


def _mlp_forward_fused(x_p, packed, dims_pad, *, act_name, activate_last, out_dtype,
                       tm, m_pad, capacity, vmem_need, single_buffer_weights):
    num_layers = len(packed) // 2
    res_kwargs = ({"pipeline_mode": pl.Buffered(1)} if single_buffer_weights else {})

    in_specs = [pl.BlockSpec((tm, dims_pad[0]), lambda i: (i, 0))]
    for li in range(num_layers):
        kp, np_ = dims_pad[li], dims_pad[li + 1]
        # Constant index_map -> block is DMA'd once and stays VMEM resident;
        # Buffered(1) drops the pointless second buffer.
        in_specs += [pl.BlockSpec((kp, np_), lambda i: (0, 0), **res_kwargs),
                     pl.BlockSpec((1, np_), lambda i: (0, 0), **res_kwargs)]

    scratch_shapes = []
    if num_layers > 1:
        max_mid = max(dims_pad[1:num_layers])
        scratch_shapes = [pltpu.VMEM((tm, max_mid), jnp.bfloat16),
                          pltpu.VMEM((tm, max_mid), jnp.bfloat16)]

    out_isize = jnp.dtype(out_dtype).itemsize
    flops = 2 * m_pad * sum(dims_pad[i] * dims_pad[i + 1] for i in range(num_layers))
    bytes_accessed = (int(x_p.size) * 2
                      + sum(int(a.size) * a.dtype.itemsize for a in packed)
                      + m_pad * dims_pad[-1] * out_isize)
    vmem_limit = int(min(0.9 * capacity, max(32 * 1024 * 1024, 1.3 * vmem_need)))

    kernel = functools.partial(_fused_mlp_kernel, num_layers=num_layers,
                               act_name=act_name, activate_last=activate_last)
    return pl.pallas_call(
        kernel,
        out_shape=jax.ShapeDtypeStruct((m_pad, dims_pad[-1]), out_dtype),
        grid_spec=pltpu.PrefetchScalarGridSpec(
            num_scalar_prefetch=0,
            grid=(m_pad // tm,),
            in_specs=in_specs,
            out_specs=pl.BlockSpec((tm, dims_pad[-1]), lambda i: (i, 0)),
            scratch_shapes=scratch_shapes),
        compiler_params=pltpu.CompilerParams(
            dimension_semantics=("parallel",),
            vmem_limit_bytes=vmem_limit),
        cost_estimate=pl.CostEstimate(flops=int(flops), transcendentals=0,
                                      bytes_accessed=int(bytes_accessed)),
    )(x_p, *packed)


# ---------------------------------------------------------------------------
# Layer-by-layer (M,N,K)-tiled fallback for MLPs whose padded weights do not
# fit the per-generation resident-weight VMEM budget.
# ---------------------------------------------------------------------------
def _linear_kernel(x_ref, w_ref, b_ref, o_ref, acc_ref, *, act_name, do_act):
    k = pl.program_id(2)

    @pl.when(k == 0)
    def _():
        acc_ref[...] = jnp.zeros_like(acc_ref)

    acc_ref[...] += jnp.dot(x_ref[...], w_ref[...],
                            preferred_element_type=jnp.float32)

    @pl.when(k == pl.num_programs(2) - 1)
    def _():
        y = acc_ref[...] + b_ref[...]
        o_ref[...] = _epilogue(y, act_name, do_act, o_ref.dtype)


def _linear_tiled(x_p, w_p, b_p, *, act_name, do_act, out_dtype, tm, capacity):
    m_pad, k_pad = x_p.shape
    _, n_pad = w_p.shape
    tn = next(t for t in (512, 256, 128) if n_pad % t == 0)
    tk = next(t for t in (1024, 512, 256, 128) if k_pad % t == 0)

    out_isize = jnp.dtype(out_dtype).itemsize
    need = (2 * (tm * tk + tk * tn) * 2 + 2 * tn * 4
            + 2 * tm * tn * out_isize + tm * tn * 4)
    vmem_limit = int(min(0.9 * capacity, max(32 * 1024 * 1024, 2 * need)))

    return pl.pallas_call(
        functools.partial(_linear_kernel, act_name=act_name, do_act=do_act),
        out_shape=jax.ShapeDtypeStruct((m_pad, n_pad), out_dtype),
        grid_spec=pltpu.PrefetchScalarGridSpec(
            num_scalar_prefetch=0,
            grid=(m_pad // tm, n_pad // tn, k_pad // tk),
            in_specs=[pl.BlockSpec((tm, tk), lambda i, j, k: (i, k)),
                      pl.BlockSpec((tk, tn), lambda i, j, k: (k, j)),
                      pl.BlockSpec((1, tn), lambda i, j, k: (0, j))],
            out_specs=pl.BlockSpec((tm, tn), lambda i, j, k: (i, j)),
            scratch_shapes=[pltpu.VMEM((tm, tn), jnp.float32)]),
        compiler_params=pltpu.CompilerParams(
            dimension_semantics=("parallel", "parallel", "arbitrary"),
            vmem_limit_bytes=vmem_limit),
    )(x_p, w_p, b_p)


def _mlp_forward_layered(x_p, packed, dims_pad, *, act_name, activate_last,
                         out_dtype, tm, capacity):
    num_layers = len(packed) // 2
    h = x_p
    for i in range(num_layers):
        last = i == num_layers - 1
        do_act = (act_name is not None) and (activate_last if last else True)
        h = _linear_tiled(h, packed[2 * i], packed[2 * i + 1],
                          act_name=act_name, do_act=do_act,
                          out_dtype=out_dtype if last else jnp.bfloat16,
                          tm=tm, capacity=capacity)
    return h


# ---------------------------------------------------------------------------
# Public wrapper: pad to TPU-friendly shapes, pick a path, run.
# ---------------------------------------------------------------------------
def mlp_forward_pallas(x, params, *, activation="relu", activate_last=False,
                       out_dtype=jnp.bfloat16, allow_xla_fallback=False,
                       force_path=None):
    """MLP forward (Linear -> act -> ... -> Linear [-> act]).

    params: list of (w[in,out], b[out]) per Linear layer.
    force_path: None (auto) | "fused" | "layered".
    """
    m, c_in = x.shape
    num_layers = len(params)
    dims = [c_in] + [w.shape[1] for (w, _) in params]
    dims_pad = [_round_up(d, LANE) for d in dims]

    # Tiny problems are dominated by pallas_call fixed overhead; let XLA's
    # fused dot handle them when the caller allows it.
    if (allow_xla_fallback and force_path is None
            and max(dims_pad) == LANE and m <= 256):
        return mlp_reference(x, params, activation=activation,
                             activate_last=activate_last).astype(out_dtype)

    capacity = _vmem_capacity_bytes()
    tm_cap = 512 if capacity >= 100 * 1024 * 1024 else 256   # v5e/v6e vs v7x
    tm, m_pad = _choose_row_tiling(m, tm_cap)

    x_p = _pad2d(x, m_pad, dims_pad[0]).astype(jnp.bfloat16)
    packed = []
    for li, (w, b) in enumerate(params):
        kp, np_ = dims_pad[li], dims_pad[li + 1]
        packed += [_pad2d(w, kp, np_).astype(jnp.bfloat16),
                   jnp.pad(b, (0, np_ - b.shape[0])).reshape(1, np_).astype(jnp.float32)]

    # VMEM footprint of the fused, weight-resident path (weights single-buffered).
    out_isize = jnp.dtype(out_dtype).itemsize
    weight_bytes = 2 * sum(dims_pad[i] * dims_pad[i + 1] for i in range(num_layers))
    bias_bytes = 4 * sum(dims_pad[1:])
    io_bytes = 2 * tm * dims_pad[0] * 2 + 2 * tm * dims_pad[-1] * out_isize
    mid_bytes = (2 * tm * max(dims_pad[1:num_layers]) * 2) if num_layers > 1 else 0
    fused_need = weight_bytes + bias_bytes + io_bytes + mid_bytes

    fused_fits = (weight_bytes <= capacity // 3
                  and fused_need <= int(0.8 * capacity))
    use_fused = force_path == "fused" or (force_path is None and fused_fits)

    if use_fused:
        kwargs = dict(act_name=activation, activate_last=activate_last,
                      out_dtype=out_dtype, tm=tm, m_pad=m_pad, capacity=capacity)
        try:
            out = _mlp_forward_fused(x_p, packed, dims_pad, vmem_need=fused_need,
                                     single_buffer_weights=True, **kwargs)
        except Exception:
            # jax/libtpu without pipeline_mode=pl.Buffered(1) support: fall back
            # to default double-buffered resident weights (bigger footprint).
            out = _mlp_forward_fused(x_p, packed, dims_pad,
                                     vmem_need=fused_need + weight_bytes + bias_bytes,
                                     single_buffer_weights=False, **kwargs)
    else:
        out = _mlp_forward_layered(x_p, packed, dims_pad, act_name=activation,
                                   activate_last=activate_last,
                                   out_dtype=out_dtype, tm=tm, capacity=capacity)
    return out[:m, :dims[-1]]


# ---------------------------------------------------------------------------
# Pure-JAX f32 reference (matches torch MLP.forward for this config).
# ---------------------------------------------------------------------------
def mlp_reference(x, params, *, activation="relu", activate_last=False):
    n = len(params)
    for i, (w, b) in enumerate(params):
        x = x @ w + b
        if (i < n - 1 or activate_last) and activation is not None:
            x = _activate_f32(x, activation)
    return x


def init_params(key, num_layers, in_channels, hidden_channels, out_channels):
    dims = [in_channels] + [hidden_channels] * (num_layers - 1) + [out_channels]
    params = []
    for i in range(num_layers):
        c_in, c_out = dims[i], dims[i + 1]
        key, kw, kb = jax.random.split(key, 3)
        lim = (1.0 / c_in) ** 0.5        # ~ torch.nn.Linear default init
        w = jax.random.uniform(kw, (c_in, c_out), jnp.float32, -lim, lim)
        b = jax.random.uniform(kb, (c_out,), jnp.float32, -lim, lim)
        params.append((w, b))
    return params


if __name__ == "__main__":
    key = jax.random.PRNGKey(0)
    batch = 8
    num_layers = 3
    in_channels, hidden_channels, out_channels = 8, 32, 16
    activate_last = False

    key, kx = jax.random.split(key)
    x = jax.random.normal(kx, (batch, in_channels), jnp.float32)
    params = init_params(key, num_layers, in_channels, hidden_channels,
                         out_channels)

    ref = mlp_reference(x, params, activate_last=activate_last)

    # Fused, weight-resident kernel (auto-dispatch picks it at this size).
    out = mlp_forward_pallas(x, params, activate_last=activate_last)
    out = jax.block_until_ready(out)
    assert out.shape == (batch, out_channels)
    # bf16 operands/output with f32 MXU accumulation -> loosened tolerance.
    assert jnp.allclose(out.astype(jnp.float32), ref, atol=3e-2, rtol=3e-2), \
        "fused kernel mismatch vs JAX reference"

    # Layer-by-layer tiled fallback (used when padded weights exceed the
    # per-generation VMEM budget) -- exercised here too, to keep it honest.
    out2 = mlp_forward_pallas(x, params, activate_last=activate_last,
                              force_path="layered")
    out2 = jax.block_until_ready(out2)
    assert out2.shape == (batch, out_channels)
    assert jnp.allclose(out2.astype(jnp.float32), ref, atol=3e-2, rtol=3e-2), \
        "layered kernel mismatch vs JAX reference"

    # TODO(synk): use_bn / use_gn (BatchNorm1d / GraphNorm) and dropout>0 in
    # training mode are not implemented; this config uses the module defaults.
    print("KERNEL_OK")
</pallas_src>

<mosaic_0001>
module attributes {stable_mosaic.version = 11 : i64} {
  func.func @_fused_mlp_kernel(%arg0: i32, %arg1: memref<8x128xbf16, #tpu.memory_space<vmem>>, %arg2: memref<128x128xbf16, #tpu.memory_space<vmem>>, %arg3: memref<1x128xf32, #tpu.memory_space<vmem>>, %arg4: memref<128x128xbf16, #tpu.memory_space<vmem>>, %arg5: memref<1x128xf32, #tpu.memory_space<vmem>>, %arg6: memref<128x128xbf16, #tpu.memory_space<vmem>>, %arg7: memref<1x128xf32, #tpu.memory_space<vmem>>, %arg8: memref<8x128xbf16, #tpu.memory_space<vmem>>, %arg9: memref<8x128xbf16, #tpu.memory_space<vmem>>, %arg10: memref<8x128xbf16, #tpu.memory_space<vmem>>) attributes {dimension_semantics = [#tpu.dimension_semantics<parallel>], iteration_bounds = array<i64: 1>, scalar_prefetch = 0 : i64, scratch_operands = 2 : i64, tpu.core_type = #tpu.core_type<tc>, window_params = [{transform_indices = @transform_0, window_bounds = array<i64: 8, 128>}, {pipeline_mode = #tpu.pipeline_mode<synchronous>, transform_indices = @transform_1, window_bounds = array<i64: 128, 128>}, {pipeline_mode = #tpu.pipeline_mode<synchronous>, transform_indices = @transform_2, window_bounds = array<i64: 1, 128>}, {pipeline_mode = #tpu.pipeline_mode<synchronous>, transform_indices = @transform_3, window_bounds = array<i64: 128, 128>}, {pipeline_mode = #tpu.pipeline_mode<synchronous>, transform_indices = @transform_4, window_bounds = array<i64: 1, 128>}, {pipeline_mode = #tpu.pipeline_mode<synchronous>, transform_indices = @transform_5, window_bounds = array<i64: 128, 128>}, {pipeline_mode = #tpu.pipeline_mode<synchronous>, transform_indices = @transform_6, window_bounds = array<i64: 1, 128>}, {transform_indices = @transform_7, window_bounds = array<i64: 8, 128>}]} {
    %c0 = arith.constant 0 : index
    %c0_0 = arith.constant 0 : index
    %0 = vector.load %arg1[%c0, %c0_0] : memref<8x128xbf16, #tpu.memory_space<vmem>>, vector<8x128xbf16>
    %c0_1 = arith.constant 0 : index
    %c0_2 = arith.constant 0 : index
    %1 = vector.load %arg2[%c0_1, %c0_2] : memref<128x128xbf16, #tpu.memory_space<vmem>>, vector<128x128xbf16>
    %cst = arith.constant dense<0.000000e+00> : vector<8x128xf32>
    %2 = tpu.matmul %0, %1, %cst {dimension_numbers = #tpu.dot_dimension_numbers<[1], [0], [0], [1], [0, 0, 1, 1], [], []>} : vector<8x128xbf16>, vector<128x128xbf16>, vector<8x128xf32> -> vector<8x128xf32>
    %c0_3 = arith.constant 0 : index
    %c0_4 = arith.constant 0 : index
    %3 = vector.load %arg3[%c0_3, %c0_4] : memref<1x128xf32, #tpu.memory_space<vmem>>, vector<1x128xf32>
    %4 = vector.broadcast %3 : vector<1x128xf32> to vector<8x128xf32>
    %5 = arith.addf %2, %4 : vector<8x128xf32>
    %6 = arith.truncf %5 : vector<8x128xf32> to vector<8x128xbf16>
    %cst_5 = arith.constant 0.000000e+00 : bf16
    %7 = vector.broadcast %cst_5 : bf16 to vector<8x128xbf16>
    %8 = arith.maximumf %6, %7 : vector<8x128xbf16>
    %c0_6 = arith.constant 0 : index
    %c0_7 = arith.constant 0 : index
    %9 = vector.load %arg9[%c0_6, %c0_7] : memref<8x128xbf16, #tpu.memory_space<vmem>>, vector<8x128xbf16>
    tpu.vector_store %arg9[%c0_6, %c0_7], %8 {strides = array<i32>} : memref<8x128xbf16, #tpu.memory_space<vmem>>, vector<8x128xbf16>,
    %c0_8 = arith.constant 0 : index
    %c0_9 = arith.constant 0 : index
    %10 = vector.load %arg9[%c0_8, %c0_9] : memref<8x128xbf16, #tpu.memory_space<vmem>>, vector<8x128xbf16>
    %c0_10 = arith.constant 0 : index
    %c0_11 = arith.constant 0 : index
    %11 = vector.load %arg4[%c0_10, %c0_11] : memref<128x128xbf16, #tpu.memory_space<vmem>>, vector<128x128xbf16>
    %cst_12 = arith.constant dense<0.000000e+00> : vector<8x128xf32>
    %12 = tpu.matmul %10, %11, %cst_12 {dimension_numbers = #tpu.dot_dimension_numbers<[1], [0], [0], [1], [0, 0, 1, 1], [], []>} : vector<8x128xbf16>, vector<128x128xbf16>, vector<8x128xf32> -> vector<8x128xf32>
    %c0_13 = arith.constant 0 : index
    %c0_14 = arith.constant 0 : index
    %13 = vector.load %arg5[%c0_13, %c0_14] : memref<1x128xf32, #tpu.memory_space<vmem>>, vector<1x128xf32>
    %14 = vector.broadcast %13 : vector<1x128xf32> to vector<8x128xf32>
    %15 = arith.addf %12, %14 : vector<8x128xf32>
    %16 = arith.truncf %15 : vector<8x128xf32> to vector<8x128xbf16>
    %cst_15 = arith.constant 0.000000e+00 : bf16
    %17 = vector.broadcast %cst_15 : bf16 to vector<8x128xbf16>
    %18 = arith.maximumf %16, %17 : vector<8x128xbf16>
    %c0_16 = arith.constant 0 : index
    %c0_17 = arith.constant 0 : index
    %19 = vector.load %arg10[%c0_16, %c0_17] : memref<8x128xbf16, #tpu.memory_space<vmem>>, vector<8x128xbf16>
    tpu.vector_store %arg10[%c0_16, %c0_17], %18 {strides = array<i32>} : memref<8x128xbf16, #tpu.memory_space<vmem>>, vector<8x128xbf16>,
    %c0_18 = arith.constant 0 : index
    %c0_19 = arith.constant 0 : index
    %20 = vector.load %arg10[%c0_18, %c0_19] : memref<8x128xbf16, #tpu.memory_space<vmem>>, vector<8x128xbf16>
    %c0_20 = arith.constant 0 : index
    %c0_21 = arith.constant 0 : index
    %21 = vector.load %arg6[%c0_20, %c0_21] : memref<128x128xbf16, #tpu.memory_space<vmem>>, vector<128x128xbf16>
    %cst_22 = arith.constant dense<0.000000e+00> : vector<8x128xf32>
    %22 = tpu.matmul %20, %21, %cst_22 {dimension_numbers = #tpu.dot_dimension_numbers<[1], [0], [0], [1], [0, 0, 1, 1], [], []>} : vector<8x128xbf16>, vector<128x128xbf16>, vector<8x128xf32> -> vector<8x128xf32>
    %c0_23 = arith.constant 0 : index
    %c0_24 = arith.constant 0 : index
    %23 = vector.load %arg7[%c0_23, %c0_24] : memref<1x128xf32, #tpu.memory_space<vmem>>, vector<1x128xf32>
    %24 = vector.broadcast %23 : vector<1x128xf32> to vector<8x128xf32>
    %25 = arith.addf %22, %24 : vector<8x128xf32>
    %26 = arith.truncf %25 : vector<8x128xf32> to vector<8x128xbf16>
    %c0_25 = arith.constant 0 : index
    %c0_26 = arith.constant 0 : index
    %27 = vector.load %arg8[%c0_25, %c0_26] : memref<8x128xbf16, #tpu.memory_space<vmem>>, vector<8x128xbf16>
    tpu.vector_store %arg8[%c0_25, %c0_26], %26 {strides = array<i32>} : memref<8x128xbf16, #tpu.memory_space<vmem>>, vector<8x128xbf16>,
    return
  }
  func.func @transform_0(%arg0: i32) -> (i32, i32) {
    %c0_i32 = arith.constant 0 : i32
    %c0_i32_0 = arith.constant 0 : i32
    return %arg0, %c0_i32 : i32, i32
  }
  func.func @transform_1(%arg0: i32) -> (i32, i32) {
    %c0_i32 = arith.constant 0 : i32
    %c0_i32_0 = arith.constant 0 : i32
    %c0_i32_1 = arith.constant 0 : i32
    return %c0_i32, %c0_i32_0 : i32, i32
  }
  func.func @transform_2(%arg0: i32) -> (i32, i32) {
    %c0_i32 = arith.constant 0 : i32
    %c0_i32_0 = arith.constant 0 : i32
    %c0_i32_1 = arith.constant 0 : i32
    return %c0_i32, %c0_i32_0 : i32, i32
  }
  func.func @transform_3(%arg0: i32) -> (i32, i32) {
    %c0_i32 = arith.constant 0 : i32
    %c0_i32_0 = arith.constant 0 : i32
    %c0_i32_1 = arith.constant 0 : i32
    return %c0_i32, %c0_i32_0 : i32, i32
  }
  func.func @transform_4(%arg0: i32) -> (i32, i32) {
    %c0_i32 = arith.constant 0 : i32
    %c0_i32_0 = arith.constant 0 : i32
    %c0_i32_1 = arith.constant 0 : i32
    return %c0_i32, %c0_i32_0 : i32, i32
  }
  func.func @transform_5(%arg0: i32) -> (i32, i32) {
    %c0_i32 = arith.constant 0 : i32
    %c0_i32_0 = arith.constant 0 : i32
    %c0_i32_1 = arith.constant 0 : i32
    return %c0_i32, %c0_i32_0 : i32, i32
  }
  func.func @transform_6(%arg0: i32) -> (i32, i32) {
    %c0_i32 = arith.constant 0 : i32
    %c0_i32_0 = arith.constant 0 : i32
    %c0_i32_1 = arith.constant 0 : i32
    return %c0_i32, %c0_i32_0 : i32, i32
  }
  func.func @transform_7(%arg0: i32) -> (i32, i32) {
    %c0_i32 = arith.constant 0 : i32
    %c0_i32_0 = arith.constant 0 : i32
    return %arg0, %c0_i32 : i32, i32
  }
}

module attributes {stable_mosaic.version = 11 : i64} {
  func.func @_fused_mlp_kernel(%arg0: i32, %arg1: memref<8x128xbf16, #tpu.memory_space<vmem>>, %arg2: memref<128x128xbf16, #tpu.memory_space<vmem>>, %arg3: memref<1x128xf32, #tpu.memory_space<vmem>>, %arg4: memref<128x128xbf16, #tpu.memory_space<vmem>>, %arg5: memref<1x128xf32, #tpu.memory_space<vmem>>, %arg6: memref<128x128xbf16, #tpu.memory_space<vmem>>, %arg7: memref<1x128xf32, #tpu.memory_space<vmem>>, %arg8: memref<8x128xbf16, #tpu.memory_space<vmem>>, %arg9: memref<8x128xbf16, #tpu.memory_space<vmem>>, %arg10: memref<8x128xbf16, #tpu.memory_space<vmem>>) attributes {dimension_semantics = [#tpu.dimension_semantics<parallel>], iteration_bounds = array<i64: 1>, scalar_prefetch = 0 : i64, scratch_operands = 2 : i64, tpu.core_type = #tpu.core_type<tc>, window_params = [{transform_indices = @transform_0, window_bounds = array<i64: 8, 128>}, {pipeline_mode = #tpu.pipeline_mode<synchronous>, transform_indices = @transform_1, window_bounds = array<i64: 128, 128>}, {pipeline_mode = #tpu.pipeline_mode<synchronous>, transform_indices = @transform_2, window_bounds = array<i64: 1, 128>}, {pipeline_mode = #tpu.pipeline_mode<synchronous>, transform_indices = @transform_3, window_bounds = array<i64: 128, 128>}, {pipeline_mode = #tpu.pipeline_mode<synchronous>, transform_indices = @transform_4, window_bounds = array<i64: 1, 128>}, {pipeline_mode = #tpu.pipeline_mode<synchronous>, transform_indices = @transform_5, window_bounds = array<i64: 128, 128>}, {pipeline_mode = #tpu.pipeline_mode<synchronous>, transform_indices = @transform_6, window_bounds = array<i64: 1, 128>}, {transform_indices = @transform_7, window_bounds = array<i64: 8, 128>}]} {
    %c0 = arith.constant 0 : index
    %c0_0 = arith.constant 0 : index
    %0 = vector.load %arg1[%c0, %c0_0] : memref<8x128xbf16, #tpu.memory_space<vmem>>, vector<8x128xbf16>
    %c0_1 = arith.constant 0 : index
    %c0_2 = arith.constant 0 : index
    %1 = vector.load %arg2[%c0_1, %c0_2] : memref<128x128xbf16, #tpu.memory_space<vmem>>, vector<128x128xbf16>
    %cst = arith.constant dense<0.000000e+00> : vector<8x128xf32>
    %2 = tpu.matmul %0, %1, %cst {dimension_numbers = #tpu.dot_dimension_numbers<[1], [0], [0], [1], [0, 0, 1, 1], [], []>} : vector<8x128xbf16>, vector<128x128xbf16>, vector<8x128xf32> -> vector<8x128xf32>
    %c0_3 = arith.constant 0 : index
    %c0_4 = arith.constant 0 : index
    %3 = vector.load %arg3[%c0_3, %c0_4] : memref<1x128xf32, #tpu.memory_space<vmem>>, vector<1x128xf32>
    %4 = vector.broadcast %3 : vector<1x128xf32> to vector<8x128xf32>
    %5 = arith.addf %2, %4 : vector<8x128xf32>
    %6 = arith.truncf %5 : vector<8x128xf32> to vector<8x128xbf16>
    %cst_5 = arith.constant 0.000000e+00 : bf16
    %7 = vector.broadcast %cst_5 : bf16 to vector<8x128xbf16>
    %8 = arith.maximumf %6, %7 : vector<8x128xbf16>
    %c0_6 = arith.constant 0 : index
    %c0_7 = arith.constant 0 : index
    %9 = vector.load %arg9[%c0_6, %c0_7] : memref<8x128xbf16, #tpu.memory_space<vmem>>, vector<8x128xbf16>
    tpu.vector_store %arg9[%c0_6, %c0_7], %8 {strides = array<i32>} : memref<8x128xbf16, #tpu.memory_space<vmem>>, vector<8x128xbf16>,
    %c0_8 = arith.constant 0 : index
    %c0_9 = arith.constant 0 : index
    %10 = vector.load %arg9[%c0_8, %c0_9] : memref<8x128xbf16, #tpu.memory_space<vmem>>, vector<8x128xbf16>
    %c0_10 = arith.constant 0 : index
    %c0_11 = arith.constant 0 : index
    %11 = vector.load %arg4[%c0_10, %c0_11] : memref<128x128xbf16, #tpu.memory_space<vmem>>, vector<128x128xbf16>
    %cst_12 = arith.constant dense<0.000000e+00> : vector<8x128xf32>
    %12 = tpu.matmul %10, %11, %cst_12 {dimension_numbers = #tpu.dot_dimension_numbers<[1], [0], [0], [1], [0, 0, 1, 1], [], []>} : vector<8x128xbf16>, vector<128x128xbf16>, vector<8x128xf32> -> vector<8x128xf32>
    %c0_13 = arith.constant 0 : index
    %c0_14 = arith.constant 0 : index
    %13 = vector.load %arg5[%c0_13, %c0_14] : memref<1x128xf32, #tpu.memory_space<vmem>>, vector<1x128xf32>
    %14 = vector.broadcast %13 : vector<1x128xf32> to vector<8x128xf32>
    %15 = arith.addf %12, %14 : vector<8x128xf32>
    %16 = arith.truncf %15 : vector<8x128xf32> to vector<8x128xbf16>
    %cst_15 = arith.constant 0.000000e+00 : bf16
    %17 = vector.broadcast %cst_15 : bf16 to vector<8x128xbf16>
    %18 = arith.maximumf %16, %17 : vector<8x128xbf16>
    %c0_16 = arith.constant 0 : index
    %c0_17 = arith.constant 0 : index
    %19 = vector.load %arg10[%c0_16, %c0_17] : memref<8x128xbf16, #tpu.memory_space<vmem>>, vector<8x128xbf16>
    tpu.vector_store %arg10[%c0_16, %c0_17], %18 {strides = array<i32>} : memref<8x128xbf16, #tpu.memory_space<vmem>>, vector<8x128xbf16>,
    %c0_18 = arith.constant 0 : index
    %c0_19 = arith.constant 0 : index
    %20 = vector.load %arg10[%c0_18, %c0_19] : memref<8x128xbf16, #tpu.memory_space<vmem>>, vector<8x128xbf16>
    %c0_20 = arith.constant 0 : index
    %c0_21 = arith.constant 0 : index
    %21 = vector.load %arg6[%c0_20, %c0_21] : memref<128x128xbf16, #tpu.memory_space<vmem>>, vector<128x128xbf16>
    %cst_22 = arith.constant dense<0.000000e+00> : vector<8x128xf32>
    %22 = tpu.matmul %20, %21, %cst_22 {dimension_numbers = #tpu.dot_dimension_numbers<[1], [0], [0], [1], [0, 0, 1, 1], [], []>} : vector<8x128xbf16>, vector<128x128xbf16>, vector<8x128xf32> -> vector<8x128xf32>
    %c0_23 = arith.constant 0 : index
    %c0_24 = arith.constant 0 : index
    %23 = vector.load %arg7[%c0_23, %c0_24] : memref<1x128xf32, #tpu.memory_space<vmem>>, vector<1x128xf32>
    %24 = vector.broadcast %23 : vector<1x128xf32> to vector<8x128xf32>
    %25 = arith.addf %22, %24 : vector<8x128xf32>
    %26 = arith.truncf %25 : vector<8x128xf32> to vector<8x128xbf16>
    %c0_25 = arith.constant 0 : index
    %c0_26 = arith.constant 0 : index
    %27 = vector.load %arg8[%c0_25, %c0_26] : memref<8x128xbf16, #tpu.memory_space<vmem>>, vector<8x128xbf16>
    tpu.vector_store %arg8[%c0_25, %c0_26], %26 {strides = array<i32>} : memref<8x128xbf16, #tpu.memory_space<vmem>>, vector<8x128xbf16>,
    return
  }
  func.func @transform_0(%arg0: i32) -> (i32, i32) {
    %c0_i32 = arith.constant 0 : i32
    %c0_i32_0 = arith.constant 0 : i32
    return %arg0, %c0_i32 : i32, i32
  }
  func.func @transform_1(%arg0: i32) -> (i32, i32) {
    %c0_i32 = arith.constant 0 : i32
    %c0_i32_0 = arith.constant 0 : i32
    %c0_i32_1 = arith.constant 0 : i32
    return %c0_i32, %c0_i32_0 : i32, i32
  }
  func.func @transform_2(%arg0: i32) -> (i32, i32) {
    %c0_i32 = arith.constant 0 : i32
    %c0_i32_0 = arith.constant 0 : i32
    %c0_i32_1 = arith.constant 0 : i32
    return %c0_i32, %c0_i32_0 : i32, i32
  }
  func.func @transform_3(%arg0: i32) -> (i32, i32) {
    %c0_i32 = arith.constant 0 : i32
    %c0_i32_0 = arith.constant 0 : i32
    %c0_i32_1 = arith.constant 0 : i32
    return %c0_i32, %c0_i32_0 : i32, i32
  }
  func.func @transform_4(%arg0: i32) -> (i32, i32) {
    %c0_i32 = arith.constant 0 : i32
    %c0_i32_0 = arith.constant 0 : i32
    %c0_i32_1 = arith.constant 0 : i32
    return %c0_i32, %c0_i32_0 : i32, i32
  }
  func.func @transform_5(%arg0: i32) -> (i32, i32) {
    %c0_i32 = arith.constant 0 : i32
    %c0_i32_0 = arith.constant 0 : i32
    %c0_i32_1 = arith.constant 0 : i32
    return %c0_i32, %c0_i32_0 : i32, i32
  }
  func.func @transform_6(%arg0: i32) -> (i32, i32) {
    %c0_i32 = arith.constant 0 : i32
    %c0_i32_0 = arith.constant 0 : i32
    %c0_i32_1 = arith.constant 0 : i32
    return %c0_i32, %c0_i32_0 : i32, i32
  }
  func.func @transform_7(%arg0: i32) -> (i32, i32) {
    %c0_i32 = arith.constant 0 : i32
    %c0_i32_0 = arith.constant 0 : i32
    return %arg0, %c0_i32 : i32, i32
  }
}

</mosaic_0001>

<bundles_post_ra>
// kernel: tpu_custom_call.1
= control target key start
LH: loop header
LB: loop body
LE: loop exit
PB: predicated region body
PF: predicated region fallthrough
CT: control target
= control target key end

     0   :  { %12 = vsyncpa [#allocation5], 0  ;;  %s694_s0 = inlined_call_operand.hbm [shape: bf16[8,128], index: 0, kind: input, shape index: {}]   ;;  %s695_s1 = inlined_call_operand.hbm [shape: bf16[128,128], index: 1, kind: input, shape index: {}]   ;;  %s696_s2 = inlined_call_operand.vmem [shape: f32[1,128], index: 2, kind: input, shape index: {}]   ;;  %s697_s3 = inlined_call_operand.hbm [shape: bf16[128,128], index: 3, kind: input, shape index: {}]   ;;  %s698_s4 = inlined_call_operand.vmem [shape: f32[1,128], index: 4, kind: input, shape index: {}]   ;;  %s699_s5 = inlined_call_operand.hbm [shape: bf16[128,128], index: 5, kind: input, shape index: {}]   ;;  %s700_s6 = inlined_call_operand.vmem [shape: f32[1,128], index: 6, kind: input, shape index: {}]   ;;  %s701_s7 = inlined_call_operand.hbm [shape: bf16[8,128], index: 7, kind: output, shape index: {}]  }
   0x1   :  { %13 = vsyncpa [#allocation8], 0 }
   0x2   :  { %14 = vsyncpa [#allocation11], 0  ;;  %s31_s26 = sshll.u32 %s695_s1, 4  ;;  %s32_s26 = int_to_ptr.hbm [resolvable:$true] %s31_s26 }
   0x3   :  { %15 = vsyncpa [#allocation6], 0  ;;  %s623_s27 = smov [#allocation7]   ;;  %s21_s8 = sshll.u32 %s694_s0, 4  ;;  %s22_s8 = int_to_ptr.hbm [resolvable:$true] %s21_s8 }
   0x4   :  { %s33_s28 = sshll.u32 %s623_s27, 4  ;;  %s624_s9 = smov 64   ;;  %s34_s28 = int_to_ptr.vmem [resolvable:$true] %s33_s28 }
   0x5   :  { %s625_s10 = smov 4   ;;  %s626_s11 = smov [#allocation4]  }
   0x6   :  { %39 = dma.hbm_to_vmem [thread:$0]  %s32_s26, 1024, %s34_s28, [#allocation8], %s624_s9, %s624_s9, %s625_s10  }
   0x7   :  { %s23_s12 = sshll.u32 %s626_s11, 4  ;;  %s46_s15 = sshll.u32 %s697_s3, 4  ;;  %s24_s12 = int_to_ptr.vmem [resolvable:$true] %s23_s12  ;;  %s47_s15 = int_to_ptr.hbm [resolvable:$true] %s46_s15 }
   0x8   :  { %26 = dma.hbm_to_vmem [thread:$0]  %s22_s8, 64, %s24_s12, [#allocation5]  }
   0x9   :  { %s61_s17 = sshll.u32 %s699_s5, 4  ;;  %s627_s18 = smov [#allocation9]   ;;  %s62_s17 = int_to_ptr.hbm [resolvable:$true] %s61_s17 }
   0xa   :  { %s48_s19 = sshll.u32 %s627_s18, 4  ;;  %s628_s0 = smov [#allocation10]   ;;  %s49_s19 = int_to_ptr.vmem [resolvable:$true] %s48_s19 }
   0xb   :  { %54 = dma.hbm_to_vmem [thread:$0]  %s47_s15, 1024, %s49_s19, [#allocation8], %s624_s9, %s624_s9, %s625_s10  }
   0xc   :  { %s63_s20 = sshll.u32 %s628_s0, 4  ;;  %s64_s20 = int_to_ptr.vmem [resolvable:$true] %s63_s20 }
   0xd   :  { %69 = dma.hbm_to_vmem [thread:$0]  %s62_s17, 1024, %s64_s20, [#allocation11], %s624_s9, %s624_s9, %s625_s10  }
   0xe   :  { %615 = dma.done.wait [#allocation5], 64  }
   0xf   :  { %616 = vsyncadd [#allocation5], 4294967232 }
  0x10   :  { %617 = dma.done.wait [#allocation8], 2048  }
  0x11   :  { %618 = vsyncadd [#allocation8], 4294965248 }
  0x12   :  { %619 = dma.done.wait [#allocation11], 1024  }
  0x13   :  { %620 = vsyncadd [#allocation11], 4294966272  ;;  %v468_v0 = vld [vmem:[#allocation7 + $0x38] sm:$0xff]  ;;  %v467_v1 = vld [vmem:[#allocation7 + $0x30] sm:$0xff]  ;;  %s629_s24 = smov [#allocation12]   ;;  %s353_s28 = sshll.u32 %s701_s7, 4  ;;  %s354_s28 = int_to_ptr.hbm [resolvable:$true] %s353_s28 }
  0x14   :  { %157 = vmatpush.bf16.msra.mxu0 %v468_v0  ;;  %v476_v2 = vld [vmem:[#allocation9 + $0x38] sm:$0xff]  ;;  %v475_v3 = vld [vmem:[#allocation9 + $0x30] sm:$0xff]  ;;  %v466_v4 = vld [vmem:[#allocation7 + $0x28] sm:$0xff]  ;;  %s351_s25 = sshll.u32 %s629_s24, 4  ;;  %s352_s25 = int_to_ptr.vmem [resolvable:$true] %s351_s25 }
  0x15   :  { %244 = vmatpush.bf16.msra.mxu1 %v476_v2  ;;  %v474_v5 = vld [vmem:[#allocation9 + $0x28] sm:$0xff]  ;;  %v465_v6 = vld [vmem:[#allocation7 + $0x20] sm:$0xff]  ;;  %v464_v8 = vld [vmem:[#allocation7 + $0x18] sm:$0xff] }
  0x16   :  { %v473_v7 = vld [vmem:[#allocation9 + $0x20] sm:$0xff]  ;;  %v463_v9 = vld [vmem:[#allocation7 + $0x10] sm:$0xff]  ;;  %v462_v10 = vld [vmem:[#allocation7 + $0x8] sm:$0xff] }
  0x17   :  { %v461_v11 = vld [vmem:[#allocation7] sm:$0xff]  ;;  %v88_v12 = vld [vmem:[#allocation4] sm:$0xf]  ;;  %v471_v14 = vld [vmem:[#allocation9 + $0x10] sm:$0xff] }
  0x18   :  { %158 = vmatpush.bf16.msra.mxu0 %v467_v1  ;;  %v472_v13 = vld [vmem:[#allocation9 + $0x18] sm:$0xff]  ;;  %v470_v15 = vld [vmem:[#allocation9 + $0x8] sm:$0xff]  ;;  %v469_v16 = vld [vmem:[#allocation9] sm:$0xff] }
  0x19   :  { %245 = vmatpush.bf16.msra.mxu1 %v475_v3  ;;  %v484_v17 = vld [vmem:[#allocation10 + $0x38] sm:$0xff]  ;;  %v483_v18 = vld [vmem:[#allocation10 + $0x30] sm:$0xff]  ;;  %v482_v19 = vld [vmem:[#allocation10 + $0x28] sm:$0xff] }
  0x1a   :  { %331 = vmatpush.bf16.msra.mxu2 %v484_v17  ;;  %v481_v20 = vld [vmem:[#allocation10 + $0x20] sm:$0xff]  ;;  %v492_v21 = vld [vmem:[%s696_s2] ss:$0 sm:$0xff]  ;;  %v480_v28 = vld [vmem:[#allocation10 + $0x18] sm:$0xff] }
  0x1b   :  { %v479_v29 = vld [vmem:[#allocation10 + $0x10] sm:$0xff]  ;;  %v478_v30 = vld [vmem:[#allocation10 + $0x8] sm:$0xff]  ;;  %v477_v31 = vld [vmem:[#allocation10] sm:$0xff] }
  0x1c   :  { %159 = vmatpush.bf16.msra.mxu0 %v466_v4  ;;  %v493_v32 = vld [vmem:[%s698_s4] ss:$0 sm:$0xff] }
  0x1d   :  { %246 = vmatpush.bf16.msra.mxu1 %v474_v5  ;;  %v494_v39 = vld [vmem:[%s700_s6] ss:$0 sm:$0xff] }
  0x1e   :  { %332 = vmatpush.bf16.msra.mxu2 %v483_v18 }
  0x20   :  { %160 = vmatpush.bf16.msra.mxu0 %v465_v6 }
  0x21   :  { %247 = vmatpush.bf16.msra.mxu1 %v473_v7 }
  0x22   :  { %333 = vmatpush.bf16.msra.mxu2 %v482_v19 }
  0x24   :  { %161 = vmatpush.bf16.msra.mxu0 %v464_v8 }
  0x25   :  { %248 = vmatpush.bf16.msra.mxu1 %v472_v13 }
  0x26   :  { %334 = vmatpush.bf16.msra.mxu2 %v481_v20 }
  0x28   :  { %162 = vmatpush.bf16.msra.mxu0 %v463_v9 }
  0x29   :  { %249 = vmatpush.bf16.msra.mxu1 %v471_v14 }
  0x2a   :  { %335 = vmatpush.bf16.msra.mxu2 %v480_v28 }
  0x2c   :  { %163 = vmatpush.bf16.msra.mxu0 %v462_v10 }
  0x2d   :  { %250 = vmatpush.bf16.msra.mxu1 %v470_v15 }
  0x2e   :  { %336 = vmatpush.bf16.msra.mxu2 %v479_v29 }
  0x30   :  { %164 = vmatpush.bf16.msra.mxu0 %v461_v11 }
  0x31   :  { %251 = vmatpush.bf16.msra.mxu1 %v469_v16 }
  0x32   :  { %337 = vmatpush.bf16.msra.mxu2 %v478_v30 }
  0x33   :  { %165 = vmatmul.bf16.vlgmr.msra.gmra.mxu0 %v88_v12 }
  0x36   :  { %338 = vmatpush.bf16.msra.mxu2 %v477_v31 }
  0xb0   :  { %v166_v22 = vpop.f32.mrf.mxu0 }
  0xb1   :  { %v167_v23 = vadd.f32 %v492_v21, %v166_v22 }
  0xb3   :  { %v172_v24 = vmax.f32 %v167_v23, 0.0 }
  0xb5   :  { %v173_v25 = vpack.c.bf16 %v172_v24, %v172_v24 }
  0xb7   :  { %174 = vst [vmem:[#allocation2] sm:$0xf] %v173_v25 }
  0xb8   :  { %v168_v26 = vpop.f32.mrf.mxu0 }
  0xbe   :  { %v175_v27 = vld [vmem:[#allocation2] sm:$0xf] }
  0xbf   :  { %252 = vmatmul.bf16.vlgmr.msra.gmra.mxu1 %v175_v27 }
 0x13c   :  { %v253_v33 = vpop.f32.mrf.mxu1 }
 0x13d   :  { %v254_v34 = vadd.f32 %v493_v32, %v253_v33 }
 0x13f   :  { %v259_v35 = vmax.f32 %v254_v34, 0.0 }
 0x141   :  { %v260_v36 = vpack.c.bf16 %v259_v35, %v259_v35 }
 0x143   :  { %261 = vst [vmem:[#allocation3] sm:$0xf] %v260_v36 }
 0x144   :  { %v255_v37 = vpop.f32.mrf.mxu1 }
 0x14a   :  { %v262_v38 = vld [vmem:[#allocation3] sm:$0xf] }
 0x14b   :  { %339 = vmatmul.bf16.vlgmr.msra.gmra.mxu2 %v262_v38 }
 0x1ce   :  { %v340_v40 = vpop.f32.mrf.mxu2 }
 0x1cf   :  { %v341_v41 = vadd.f32 %v494_v39, %v340_v40 }
 0x1d1   :  { %v344_v42 = vpack.c.bf16 %v341_v41, %v341_v41 }
 0x1d3   :  { %345 = vst [vmem:[#allocation12] sm:$0xf] %v344_v42 }
 0x1d4   :  { %356 = dma.vmem_to_hbm [thread:$0]  %s352_s25, 64, %s354_s28, [#allocation6]  }
 0x1d6   :  { %v342_v43 = vpop.f32.mrf.mxu2 }
 0x1d7   :  { %621 = dma.done.wait [#allocation6], 64  }
 0x1d8   :  { %622 = vsyncadd [#allocation6], 4294967232 }
 0x1d9   :  { %361 = vsyncpa [#allocation5], 1 }
 0x1da   :  { %362 = vsyncpa [#allocation8], 1 }
 0x1db   :  { %363 = vsyncpa [#allocation11], 1 }
 0x1dc   :  { %364 = vsyncpa [#allocation6], 1 }

// kernel: tpu_custom_call.1
= control target key start
LH: loop header
LB: loop body
LE: loop exit
PB: predicated region body
PF: predicated region fallthrough
CT: control target
= control target key end

     0   :  { %12 = vsyncpa [#allocation5], 0  ;;  %s694_s0 = inlined_call_operand.hbm [shape: bf16[8,128], index: 0, kind: input, shape index: {}]   ;;  %s695_s1 = inlined_call_operand.hbm [shape: bf16[128,128], index: 1, kind: input, shape index: {}]   ;;  %s696_s2 = inlined_call_operand.vmem [shape: f32[1,128], index: 2, kind: input, shape index: {}]   ;;  %s697_s3 = inlined_call_operand.hbm [shape: bf16[128,128], index: 3, kind: input, shape index: {}]   ;;  %s698_s4 = inlined_call_operand.vmem [shape: f32[1,128], index: 4, kind: input, shape index: {}]   ;;  %s699_s5 = inlined_call_operand.hbm [shape: bf16[128,128], index: 5, kind: input, shape index: {}]   ;;  %s700_s6 = inlined_call_operand.vmem [shape: f32[1,128], index: 6, kind: input, shape index: {}]   ;;  %s701_s7 = inlined_call_operand.hbm [shape: bf16[8,128], index: 7, kind: output, shape index: {}]  }
   0x1   :  { %13 = vsyncpa [#allocation8], 0 }
   0x2   :  { %14 = vsyncpa [#allocation11], 0  ;;  %s31_s26 = sshll.u32 %s695_s1, 4  ;;  %s32_s26 = int_to_ptr.hbm [resolvable:$true] %s31_s26 }
   0x3   :  { %15 = vsyncpa [#allocation6], 0  ;;  %s623_s27 = smov [#allocation7]   ;;  %s21_s8 = sshll.u32 %s694_s0, 4  ;;  %s22_s8 = int_to_ptr.hbm [resolvable:$true] %s21_s8 }
   0x4   :  { %s33_s28 = sshll.u32 %s623_s27, 4  ;;  %s624_s9 = smov 64   ;;  %s34_s28 = int_to_ptr.vmem [resolvable:$true] %s33_s28 }
   0x5   :  { %s625_s10 = smov 4   ;;  %s626_s11 = smov [#allocation4]  }
   0x6   :  { %39 = dma.hbm_to_vmem [thread:$0]  %s32_s26, 1024, %s34_s28, [#allocation8], %s624_s9, %s624_s9, %s625_s10  }
   0x7   :  { %s23_s12 = sshll.u32 %s626_s11, 4  ;;  %s46_s15 = sshll.u32 %s697_s3, 4  ;;  %s24_s12 = int_to_ptr.vmem [resolvable:$true] %s23_s12  ;;  %s47_s15 = int_to_ptr.hbm [resolvable:$true] %s46_s15 }
   0x8   :  { %26 = dma.hbm_to_vmem [thread:$0]  %s22_s8, 64, %s24_s12, [#allocation5]  }
   0x9   :  { %s61_s17 = sshll.u32 %s699_s5, 4  ;;  %s627_s18 = smov [#allocation9]   ;;  %s62_s17 = int_to_ptr.hbm [resolvable:$true] %s61_s17 }
   0xa   :  { %s48_s19 = sshll.u32 %s627_s18, 4  ;;  %s628_s0 = smov [#allocation10]   ;;  %s49_s19 = int_to_ptr.vmem [resolvable:$true] %s48_s19 }
   0xb   :  { %54 = dma.hbm_to_vmem [thread:$0]  %s47_s15, 1024, %s49_s19, [#allocation8], %s624_s9, %s624_s9, %s625_s10  }
   0xc   :  { %s63_s20 = sshll.u32 %s628_s0, 4  ;;  %s64_s20 = int_to_ptr.vmem [resolvable:$true] %s63_s20 }
   0xd   :  { %69 = dma.hbm_to_vmem [thread:$0]  %s62_s17, 1024, %s64_s20, [#allocation11], %s624_s9, %s624_s9, %s625_s10  }
   0xe   :  { %615 = dma.done.wait [#allocation5], 64  }
   0xf   :  { %616 = vsyncadd [#allocation5], 4294967232 }
  0x10   :  { %617 = dma.done.wait [#allocation8], 2048  }
  0x11   :  { %618 = vsyncadd [#allocation8], 4294965248 }
  0x12   :  { %619 = dma.done.wait [#allocation11], 1024  }
  0x13   :  { %620 = vsyncadd [#allocation11], 4294966272  ;;  %v468_v0 = vld [vmem:[#allocation7 + $0x38] sm:$0xff]  ;;  %v467_v1 = vld [vmem:[#allocation7 + $0x30] sm:$0xff]  ;;  %s629_s24 = smov [#allocation12]   ;;  %s353_s28 = sshll.u32 %s701_s7, 4  ;;  %s354_s28 = int_to_ptr.hbm [resolvable:$true] %s353_s28 }
  0x14   :  { %157 = vmatpush.bf16.msra.mxu0 %v468_v0  ;;  %v476_v2 = vld [vmem:[#allocation9 + $0x38] sm:$0xff]  ;;  %v475_v3 = vld [vmem:[#allocation9 + $0x30] sm:$0xff]  ;;  %v466_v4 = vld [vmem:[#allocation7 + $0x28] sm:$0xff]  ;;  %s351_s25 = sshll.u32 %s629_s24, 4  ;;  %s352_s25 = int_to_ptr.vmem [resolvable:$true] %s351_s25 }
  0x15   :  { %244 = vmatpush.bf16.msra.mxu1 %v476_v2  ;;  %v474_v5 = vld [vmem:[#allocation9 + $0x28] sm:$0xff]  ;;  %v465_v6 = vld [vmem:[#allocation7 + $0x20] sm:$0xff]  ;;  %v464_v8 = vld [vmem:[#allocation7 + $0x18] sm:$0xff] }
  0x16   :  { %v473_v7 = vld [vmem:[#allocation9 + $0x20] sm:$0xff]  ;;  %v463_v9 = vld [vmem:[#allocation7 + $0x10] sm:$0xff]  ;;  %v462_v10 = vld [vmem:[#allocation7 + $0x8] sm:$0xff] }
  0x17   :  { %v461_v11 = vld [vmem:[#allocation7] sm:$0xff]  ;;  %v88_v12 = vld [vmem:[#allocation4] sm:$0xf]  ;;  %v471_v14 = vld [vmem:[#allocation9 + $0x10] sm:$0xff] }
  0x18   :  { %158 = vmatpush.bf16.msra.mxu0 %v467_v1  ;;  %v472_v13 = vld [vmem:[#allocation9 + $0x18] sm:$0xff]  ;;  %v470_v15 = vld [vmem:[#allocation9 + $0x8] sm:$0xff]  ;;  %v469_v16 = vld [vmem:[#allocation9] sm:$0xff] }
  0x19   :  { %245 = vmatpush.bf16.msra.mxu1 %v475_v3  ;;  %v484_v17 = vld [vmem:[#allocation10 + $0x38] sm:$0xff]  ;;  %v483_v18 = vld [vmem:[#allocation10 + $0x30] sm:$0xff]  ;;  %v482_v19 = vld [vmem:[#allocation10 + $0x28] sm:$0xff] }
  0x1a   :  { %331 = vmatpush.bf16.msra.mxu2 %v484_v17  ;;  %v481_v20 = vld [vmem:[#allocation10 + $0x20] sm:$0xff]  ;;  %v492_v21 = vld [vmem:[%s696_s2] ss:$0 sm:$0xff]  ;;  %v480_v28 = vld [vmem:[#allocation10 + $0x18] sm:$0xff] }
  0x1b   :  { %v479_v29 = vld [vmem:[#allocation10 + $0x10] sm:$0xff]  ;;  %v478_v30 = vld [vmem:[#allocation10 + $0x8] sm:$0xff]  ;;  %v477_v31 = vld [vmem:[#allocation10] sm:$0xff] }
  0x1c   :  { %159 = vmatpush.bf16.msra.mxu0 %v466_v4  ;;  %v493_v32 = vld [vmem:[%s698_s4] ss:$0 sm:$0xff] }
  0x1d   :  { %246 = vmatpush.bf16.msra.mxu1 %v474_v5  ;;  %v494_v39 = vld [vmem:[%s700_s6] ss:$0 sm:$0xff] }
  0x1e   :  { %332 = vmatpush.bf16.msra.mxu2 %v483_v18 }
  0x20   :  { %160 = vmatpush.bf16.msra.mxu0 %v465_v6 }
  0x21   :  { %247 = vmatpush.bf16.msra.mxu1 %v473_v7 }
  0x22   :  { %333 = vmatpush.bf16.msra.mxu2 %v482_v19 }
  0x24   :  { %161 = vmatpush.bf16.msra.mxu0 %v464_v8 }
  0x25   :  { %248 = vmatpush.bf16.msra.mxu1 %v472_v13 }
  0x26   :  { %334 = vmatpush.bf16.msra.mxu2 %v481_v20 }
  0x28   :  { %162 = vmatpush.bf16.msra.mxu0 %v463_v9 }
  0x29   :  { %249 = vmatpush.bf16.msra.mxu1 %v471_v14 }
  0x2a   :  { %335 = vmatpush.bf16.msra.mxu2 %v480_v28 }
  0x2c   :  { %163 = vmatpush.bf16.msra.mxu0 %v462_v10 }
  0x2d   :  { %250 = vmatpush.bf16.msra.mxu1 %v470_v15 }
  0x2e   :  { %336 = vmatpush.bf16.msra.mxu2 %v479_v29 }
  0x30   :  { %164 = vmatpush.bf16.msra.mxu0 %v461_v11 }
  0x31   :  { %251 = vmatpush.bf16.msra.mxu1 %v469_v16 }
  0x32   :  { %337 = vmatpush.bf16.msra.mxu2 %v478_v30 }
  0x33   :  { %165 = vmatmul.bf16.vlgmr.msra.gmra.mxu0 %v88_v12 }
  0x36   :  { %338 = vmatpush.bf16.msra.mxu2 %v477_v31 }
  0xb0   :  { %v166_v22 = vpop.f32.mrf.mxu0 }
  0xb1   :  { %v167_v23 = vadd.f32 %v492_v21, %v166_v22 }
  0xb3   :  { %v172_v24 = vmax.f32 %v167_v23, 0.0 }
  0xb5   :  { %v173_v25 = vpack.c.bf16 %v172_v24, %v172_v24 }
  0xb7   :  { %174 = vst [vmem:[#allocation2] sm:$0xf] %v173_v25 }
  0xb8   :  { %v168_v26 = vpop.f32.mrf.mxu0 }
  0xbe   :  { %v175_v27 = vld [vmem:[#allocation2] sm:$0xf] }
  0xbf   :  { %252 = vmatmul.bf16.vlgmr.msra.gmra.mxu1 %v175_v27 }
 0x13c   :  { %v253_v33 = vpop.f32.mrf.mxu1 }
 0x13d   :  { %v254_v34 = vadd.f32 %v493_v32, %v253_v33 }
 0x13f   :  { %v259_v35 = vmax.f32 %v254_v34, 0.0 }
 0x141   :  { %v260_v36 = vpack.c.bf16 %v259_v35, %v259_v35 }
 0x143   :  { %261 = vst [vmem:[#allocation3] sm:$0xf] %v260_v36 }
 0x144   :  { %v255_v37 = vpop.f32.mrf.mxu1 }
 0x14a   :  { %v262_v38 = vld [vmem:[#allocation3] sm:$0xf] }
 0x14b   :  { %339 = vmatmul.bf16.vlgmr.msra.gmra.mxu2 %v262_v38 }
 0x1ce   :  { %v340_v40 = vpop.f32.mrf.mxu2 }
 0x1cf   :  { %v341_v41 = vadd.f32 %v494_v39, %v340_v40 }
 0x1d1   :  { %v344_v42 = vpack.c.bf16 %v341_v41, %v341_v41 }
 0x1d3   :  { %345 = vst [vmem:[#allocation12] sm:$0xf] %v344_v42 }
 0x1d4   :  { %356 = dma.vmem_to_hbm [thread:$0]  %s352_s25, 64, %s354_s28, [#allocation6]  }
 0x1d6   :  { %v342_v43 = vpop.f32.mrf.mxu2 }
 0x1d7   :  { %621 = dma.done.wait [#allocation6], 64  }
 0x1d8   :  { %622 = vsyncadd [#allocation6], 4294967232 }
 0x1d9   :  { %361 = vsyncpa [#allocation5], 1 }
 0x1da   :  { %362 = vsyncpa [#allocation8], 1 }
 0x1db   :  { %363 = vsyncpa [#allocation11], 1 }
 0x1dc   :  { %364 = vsyncpa [#allocation6], 1 }

</bundles_post_ra>
